<compile_context>
chip_gen: v5e
topology: v5e:2x2
jax: 0.10.0
libtpu: 0.0.40
codegen_flags: <defaults>
</compile_context>

<pallas_src>
import math
import functools

import jax
import jax.numpy as jnp
from jax.experimental import pallas as pl
from jax.experimental.pallas import tpu as pltpu


def _cluster_loss_kernel(ci_ref, cj_ref, out_ref, cc_ref, g_acc, p_acc, *,
                         class_num, temperature, batch, block_b, need_mask):
    C = class_num
    N = 2 * C
    step = pl.program_id(0)

    @pl.when(step == 0)
    def _init():
        g_acc[...] = jnp.zeros_like(g_acc)
        p_acc[...] = jnp.zeros_like(p_acc)

    # Assemble the lane-dense (block_b, N) tile [c_i | c_j] directly in VMEM.
    cc_ref[:, 0:C] = ci_ref[...]
    cc_ref[:, C:N] = cj_ref[...]
    cc = cc_ref[...]
    if need_mask:
        # Zero out padded batch rows of the final partial block.
        r = jax.lax.broadcasted_iota(jnp.int32, (block_b, N), 0)
        cc = jnp.where(step * block_b + r < batch, cc, 0.0)

    # Gram accumulation over the batch; contraction over dim 0 of both operands.
    g_acc[...] += jax.lax.dot_general(
        cc, cc,
        dimension_numbers=(((0,), (0,)), ((), ())),
        preferred_element_type=jnp.float32,
    )
    # Per-cluster soft-assignment mass (for the entropy regularizer).
    p_acc[...] += jnp.sum(cc, axis=0, keepdims=True)

    @pl.when(step == pl.num_programs(0) - 1)
    def _finalize():
        G = g_acc[...]            # (N, N) = [c_i|c_j]^T @ [c_i|c_j] over the full batch
        p = p_acc[...]            # (1, N)  column sums over the full batch

        # ---- entropy regularizer (ne_loss) --------------------------------
        colp = jax.lax.broadcasted_iota(jnp.int32, (1, N), 1)
        left = colp < C
        s_i = jnp.sum(jnp.where(left, p, 0.0))
        s_j = jnp.sum(jnp.where(left, 0.0, p))
        p_norm = jnp.where(left, p * (1.0 / s_i), p * (1.0 / s_j))
        ne_loss = 2.0 * math.log(C) + jnp.sum(p_norm * jnp.log(p_norm))

        # ---- cosine-similarity logits from the Gram diagonal ---------------
        row = jax.lax.broadcasted_iota(jnp.int32, (N, N), 0)
        col = jax.lax.broadcasted_iota(jnp.int32, (N, N), 1)
        eye = row == col
        gd = jnp.where(eye, G, 0.0)
        d_row = jnp.sum(gd, axis=1, keepdims=True)             # (N, 1) squared norms
        d_col = jnp.sum(gd, axis=0, keepdims=True)             # (1, N)
        # clamp equivalent to max(norm, 1e-8): norm^2 >= 1e-16
        r_row = jax.lax.rsqrt(jnp.maximum(d_row, 1e-16)) * (1.0 / temperature)
        r_col = jax.lax.rsqrt(jnp.maximum(d_col, 1e-16))
        sim = G * r_row * r_col                                 # (N, N)

        # CrossEntropy(reduction='sum', label 0) over {positive} U negatives of
        # each row == off-diagonal logsumexp minus the positive logit.
        NEG = jnp.float32(-1e30)   # finite sentinel keeps max/exp inf-free
        sim_nd = jnp.where(eye, NEG, sim)
        m = jnp.max(sim_nd, axis=1, keepdims=True)
        lse = m + jnp.log(jnp.sum(jnp.exp(sim_nd - m), axis=1, keepdims=True))
        pos = jnp.sum(jnp.where(jnp.abs(col - row) == C, sim, 0.0),
                      axis=1, keepdims=True)
        ce_sum = jnp.sum(lse - pos)

        out_ref[0, 0] = ce_sum * (1.0 / N) + ne_loss


def cluster_loss(c_i, c_j, class_num, temperature, *, block_b=1024):
    """c_i, c_j: (batch, class_num) soft cluster assignments (PyTorch layout)."""
    B, C = c_i.shape
    assert c_j.shape == (B, C) and C == class_num
    N = 2 * C

    # Batch tiling: whole batch in one block when small; otherwise stream
    # (multiple-of-8) batch tiles and accumulate G / p in VMEM scratch.
    if B <= block_b:
        tb = B
    else:
        tb = max(8, (block_b // 8) * 8)
    nb = pl.cdiv(B, tb)
    need_mask = (B % tb) != 0

    kernel = functools.partial(
        _cluster_loss_kernel,
        class_num=class_num, temperature=float(temperature),
        batch=B, block_b=tb, need_mask=need_mask)

    out = pl.pallas_call(
        kernel,
        out_shape=jax.ShapeDtypeStruct((1, 1), jnp.float32),
        grid_spec=pltpu.PrefetchScalarGridSpec(
            num_scalar_prefetch=0,
            grid=(nb,),
            in_specs=[pl.BlockSpec((tb, C), lambda b: (b, 0)),
                      pl.BlockSpec((tb, C), lambda b: (b, 0))],
            out_specs=pl.BlockSpec((1, 1), lambda b: (0, 0),
                                   memory_space=pltpu.MemorySpace.SMEM),
            scratch_shapes=[pltpu.VMEM((tb, N), jnp.float32),   # [c_i | c_j] tile
                            pltpu.VMEM((N, N), jnp.float32),    # Gram accumulator
                            pltpu.VMEM((1, N), jnp.float32)]),  # column-sum accumulator
        compiler_params=pltpu.CompilerParams(
            dimension_semantics=("arbitrary",)),                # batch axis reduces into scratch
    )(c_i.astype(jnp.float32), c_j.astype(jnp.float32))
    return out[0, 0]


# ---- pure-JAX reference (mirrors the PyTorch forward literally) -------------
def cluster_loss_ref(c_i, c_j, class_num, temperature):
    p_i = c_i.sum(0)
    p_i = p_i / p_i.sum()
    ne_i = math.log(p_i.shape[0]) + (p_i * jnp.log(p_i)).sum()
    p_j = c_j.sum(0)
    p_j = p_j / p_j.sum()
    ne_j = math.log(p_j.shape[0]) + (p_j * jnp.log(p_j)).sum()
    ne_loss = ne_i + ne_j

    N = 2 * class_num
    c = jnp.concatenate([c_i.T, c_j.T], axis=0)
    norm = jnp.sqrt(jnp.sum(c * c, axis=1, keepdims=True))
    cn = c / jnp.maximum(norm, 1e-8)
    sim = (cn @ cn.T) / temperature

    sim_i_j = jnp.diagonal(sim, class_num)
    sim_j_i = jnp.diagonal(sim, -class_num)
    positive = jnp.concatenate([sim_i_j, sim_j_i]).reshape(N, 1)

    import numpy as np
    mask = np.ones((N, N), dtype=bool)
    np.fill_diagonal(mask, False)
    for i in range(class_num):
        mask[i, class_num + i] = False
        mask[class_num + i, i] = False
    negatives = sim[jnp.asarray(mask)].reshape(N, N - 2)

    logits = jnp.concatenate([positive, negatives], axis=1)
    lse = jax.scipy.special.logsumexp(logits, axis=1)
    loss = jnp.sum(lse - logits[:, 0]) / N
    return loss + ne_loss


if __name__ == "__main__":
    key = jax.random.PRNGKey(0)
    k1, k2, k3, k4 = jax.random.split(key, 4)

    # --- test 1: small, single grid step (whole batch resident) ---
    class_num, batch, temperature = 16, 8, 0.5
    c_i = jax.nn.softmax(jax.random.normal(k1, (batch, class_num), jnp.float32), axis=1)
    c_j = jax.nn.softmax(jax.random.normal(k2, (batch, class_num), jnp.float32), axis=1)
    out = jax.block_until_ready(cluster_loss(c_i, c_j, class_num, temperature))
    ref = cluster_loss_ref(c_i, c_j, class_num, temperature)
    assert jnp.allclose(out, ref, rtol=1e-4, atol=1e-4), (out, ref)

    # --- test 2: tiled batch with a partial last block (exercises the grid path) ---
    class_num2, batch2, temperature2 = 64, 40, 1.0
    c_i2 = jax.nn.softmax(jax.random.normal(k3, (batch2, class_num2), jnp.float32), axis=1)
    c_j2 = jax.nn.softmax(jax.random.normal(k4, (batch2, class_num2), jnp.float32), axis=1)
    out2 = jax.block_until_ready(
        cluster_loss(c_i2, c_j2, class_num2, temperature2, block_b=16))
    ref2 = cluster_loss_ref(c_i2, c_j2, class_num2, temperature2)
    assert jnp.allclose(out2, ref2, rtol=1e-4, atol=1e-4), (out2, ref2)

    print("KERNEL_OK")
</pallas_src>

<mosaic_0001>
module attributes {stable_mosaic.version = 11 : i64} {
  func.func @_cluster_loss_kernel(%arg0: i32, %arg1: memref<8x16xf32, #tpu.memory_space<vmem>>, %arg2: memref<8x16xf32, #tpu.memory_space<vmem>>, %arg3: memref<1x1xf32, #tpu.memory_space<smem>>, %arg4: memref<8x32xf32, #tpu.memory_space<vmem>>, %arg5: memref<32x32xf32, #tpu.memory_space<vmem>>, %arg6: memref<1x32xf32, #tpu.memory_space<vmem>>) attributes {dimension_semantics = [#tpu.dimension_semantics<arbitrary>], iteration_bounds = array<i64: 1>, scalar_prefetch = 0 : i64, scratch_operands = 3 : i64, tpu.core_type = #tpu.core_type<tc>, window_params = [{transform_indices = @transform_0, window_bounds = array<i64: 8, 16>}, {transform_indices = @transform_1, window_bounds = array<i64: 8, 16>}, {transform_indices = @transform_2, window_bounds = array<i64: 1, 1>}]} {
    %c0_i32 = arith.constant 0 : i32
    %0 = arith.cmpi eq, %arg0, %c0_i32 : i32
    %1 = arith.extui %0 : i1 to i32
    %c0_i32_0 = arith.constant 0 : i32
    %2 = arith.cmpi ne, %1, %c0_i32_0 : i32
    scf.if %2 {
      %cst_20 = arith.constant 0.000000e+00 : f32
      %20 = vector.broadcast %cst_20 : f32 to vector<32x32xf32>
      %c0_21 = arith.constant 0 : index
      %c0_22 = arith.constant 0 : index
      %21 = vector.load %arg5[%c0_21, %c0_22] : memref<32x32xf32, #tpu.memory_space<vmem>>, vector<32x32xf32>
      tpu.vector_store %arg5[%c0_21, %c0_22], %20 {strides = array<i32>} : memref<32x32xf32, #tpu.memory_space<vmem>>, vector<32x32xf32>,
      %cst_23 = arith.constant 0.000000e+00 : f32
      %22 = vector.broadcast %cst_23 : f32 to vector<1x32xf32>
      %c0_24 = arith.constant 0 : index
      %c0_25 = arith.constant 0 : index
      %23 = vector.load %arg6[%c0_24, %c0_25] : memref<1x32xf32, #tpu.memory_space<vmem>>, vector<1x32xf32>
      tpu.vector_store %arg6[%c0_24, %c0_25], %22 {strides = array<i32>} : memref<1x32xf32, #tpu.memory_space<vmem>>, vector<1x32xf32>,
    } else {
    }
    %c0 = arith.constant 0 : index
    %c0_1 = arith.constant 0 : index
    %3 = vector.load %arg1[%c0, %c0_1] : memref<8x16xf32, #tpu.memory_space<vmem>>, vector<8x16xf32>
    %c0_2 = arith.constant 0 : index
    %c0_3 = arith.constant 0 : index
    %4 = vector.load %arg4[%c0_2, %c0_3] : memref<8x32xf32, #tpu.memory_space<vmem>>, vector<8x16xf32>
    tpu.vector_store %arg4[%c0_2, %c0_3], %3 {strides = array<i32>} : memref<8x32xf32, #tpu.memory_space<vmem>>, vector<8x16xf32>,
    %c0_4 = arith.constant 0 : index
    %c0_5 = arith.constant 0 : index
    %5 = vector.load %arg2[%c0_4, %c0_5] : memref<8x16xf32, #tpu.memory_space<vmem>>, vector<8x16xf32>
    %c0_6 = arith.constant 0 : index
    %c16 = arith.constant 16 : index
    %6 = vector.load %arg4[%c0_6, %c16] : memref<8x32xf32, #tpu.memory_space<vmem>>, vector<8x16xf32>
    tpu.vector_store %arg4[%c0_6, %c16], %5 {strides = array<i32>} : memref<8x32xf32, #tpu.memory_space<vmem>>, vector<8x16xf32>,
    %c0_7 = arith.constant 0 : index
    %c0_8 = arith.constant 0 : index
    %7 = vector.load %arg4[%c0_7, %c0_8] : memref<8x32xf32, #tpu.memory_space<vmem>>, vector<8x32xf32>
    %c0_9 = arith.constant 0 : index
    %c0_10 = arith.constant 0 : index
    %8 = vector.load %arg5[%c0_9, %c0_10] : memref<32x32xf32, #tpu.memory_space<vmem>>, vector<32x32xf32>
    %cst = arith.constant dense<0.000000e+00> : vector<32x32xf32>
    %9 = tpu.matmul %7, %7, %cst {dimension_numbers = #tpu.dot_dimension_numbers<[0], [0], [1], [1], [0, 1, 1, 1], [], []>} : vector<8x32xf32>, vector<8x32xf32>, vector<32x32xf32> -> vector<32x32xf32>
    %10 = arith.addf %8, %9 : vector<32x32xf32>
    %c0_11 = arith.constant 0 : index
    %c0_12 = arith.constant 0 : index
    %11 = vector.load %arg5[%c0_11, %c0_12] : memref<32x32xf32, #tpu.memory_space<vmem>>, vector<32x32xf32>
    tpu.vector_store %arg5[%c0_11, %c0_12], %10 {strides = array<i32>} : memref<32x32xf32, #tpu.memory_space<vmem>>, vector<32x32xf32>,
    %c0_13 = arith.constant 0 : index
    %c0_14 = arith.constant 0 : index
    %12 = vector.load %arg6[%c0_13, %c0_14] : memref<1x32xf32, #tpu.memory_space<vmem>>, vector<1x32xf32>
    %cst_15 = arith.constant dense<0.000000e+00> : vector<32xf32>
    %13 = vector.multi_reduction <add>, %7, %cst_15 [0] : vector<8x32xf32> to vector<32xf32>
    %14 = vector.shape_cast %13 : vector<32xf32> to vector<1x32xf32>
    %15 = arith.addf %12, %14 : vector<1x32xf32>
    %c0_16 = arith.constant 0 : index
    %c0_17 = arith.constant 0 : index
    %16 = vector.load %arg6[%c0_16, %c0_17] : memref<1x32xf32, #tpu.memory_space<vmem>>, vector<1x32xf32>
    tpu.vector_store %arg6[%c0_16, %c0_17], %15 {strides = array<i32>} : memref<1x32xf32, #tpu.memory_space<vmem>>, vector<1x32xf32>,
    %c0_i32_18 = arith.constant 0 : i32
    %17 = arith.cmpi eq, %arg0, %c0_i32_18 : i32
    %18 = arith.extui %17 : i1 to i32
    %c0_i32_19 = arith.constant 0 : i32
    %19 = arith.cmpi ne, %18, %c0_i32_19 : i32
    scf.if %19 {
      %c0_20 = arith.constant 0 : index
      %c0_21 = arith.constant 0 : index
      %20 = vector.load %arg5[%c0_20, %c0_21] : memref<32x32xf32, #tpu.memory_space<vmem>>, vector<32x32xf32>
      %c0_22 = arith.constant 0 : index
      %c0_23 = arith.constant 0 : index
      %21 = vector.load %arg6[%c0_22, %c0_23] : memref<1x32xf32, #tpu.memory_space<vmem>>, vector<1x32xf32>
      %22 = tpu.iota {dimensions = array<i32: 1>} : vector<1x32xi32>
      %c16_i32 = arith.constant 16 : i32
      %23 = vector.broadcast %c16_i32 : i32 to vector<1x32xi32>
      %24 = arith.cmpi slt, %22, %23 : vector<1x32xi32>
      %cst_24 = arith.constant 0.000000e+00 : f32
      %25 = vector.broadcast %cst_24 : f32 to vector<1x32xf32>
      %26 = arith.select %24, %21, %25 : vector<1x32xi1>, vector<1x32xf32>
      %27 = vector.shape_cast %26 : vector<1x32xf32> to vector<1x1x32xf32>
      %cst_25 = arith.constant dense<0.000000e+00> : vector<1xf32>
      %28 = vector.multi_reduction <add>, %27, %cst_25 [1, 2] : vector<1x1x32xf32> to vector<1xf32>
      %29 = vector.shape_cast %28 : vector<1xf32> to vector<1x1x1xf32>
      %30 = vector.extract %29[0, 0, 0] : f32 from vector<1x1x1xf32>
      %cst_26 = arith.constant 0.000000e+00 : f32
      %31 = vector.broadcast %cst_26 : f32 to vector<1x32xf32>
      %32 = arith.select %24, %31, %21 : vector<1x32xi1>, vector<1x32xf32>
      %33 = vector.shape_cast %32 : vector<1x32xf32> to vector<1x1x32xf32>
      %cst_27 = arith.constant dense<0.000000e+00> : vector<1xf32>
      %34 = vector.multi_reduction <add>, %33, %cst_27 [1, 2] : vector<1x1x32xf32> to vector<1xf32>
      %35 = vector.shape_cast %34 : vector<1xf32> to vector<1x1x1xf32>
      %36 = vector.extract %35[0, 0, 0] : f32 from vector<1x1x1xf32>
      %cst_28 = arith.constant 1.000000e+00 : f32
      %37 = arith.divf %cst_28, %30 : f32
      %38 = vector.broadcast %37 : f32 to vector<1x32xf32>
      %39 = arith.mulf %21, %38 : vector<1x32xf32>
      %cst_29 = arith.constant 1.000000e+00 : f32
      %40 = arith.divf %cst_29, %36 : f32
      %41 = vector.broadcast %40 : f32 to vector<1x32xf32>
      %42 = arith.mulf %21, %41 : vector<1x32xf32>
      %43 = arith.select %24, %39, %42 : vector<1x32xi1>, vector<1x32xf32>
      %44 = math.log %43 : vector<1x32xf32>
      %45 = arith.mulf %43, %44 : vector<1x32xf32>
      %46 = vector.shape_cast %45 : vector<1x32xf32> to vector<1x1x32xf32>
      %cst_30 = arith.constant dense<0.000000e+00> : vector<1xf32>
      %47 = vector.multi_reduction <add>, %46, %cst_30 [1, 2] : vector<1x1x32xf32> to vector<1xf32>
      %48 = vector.shape_cast %47 : vector<1xf32> to vector<1x1x1xf32>
      %49 = vector.extract %48[0, 0, 0] : f32 from vector<1x1x1xf32>
      %cst_31 = arith.constant 5.54517746 : f32
      %50 = arith.addf %cst_31, %49 : f32
      %51 = tpu.iota {dimensions = array<i32: 0>} : vector<32x32xi32>
      %52 = tpu.iota {dimensions = array<i32: 1>} : vector<32x32xi32>
      %53 = arith.cmpi eq, %51, %52 : vector<32x32xi32>
      %cst_32 = arith.constant 0.000000e+00 : f32
      %54 = vector.broadcast %cst_32 : f32 to vector<32x32xf32>
      %55 = arith.select %53, %20, %54 : vector<32x32xi1>, vector<32x32xf32>
      %cst_33 = arith.constant dense<0.000000e+00> : vector<32xf32>
      %56 = vector.multi_reduction <add>, %55, %cst_33 [1] : vector<32x32xf32> to vector<32xf32>
      %57 = vector.shape_cast %56 : vector<32xf32> to vector<32x1xf32>
      %cst_34 = arith.constant dense<0.000000e+00> : vector<32xf32>
      %58 = vector.multi_reduction <add>, %55, %cst_34 [0] : vector<32x32xf32> to vector<32xf32>
      %59 = vector.shape_cast %58 : vector<32xf32> to vector<1x32xf32>
      %cst_35 = arith.constant 1.000000e-16 : f32
      %60 = vector.broadcast %cst_35 : f32 to vector<32x1xf32>
      %61 = arith.maximumf %57, %60 : vector<32x1xf32>
      %62 = math.rsqrt %61 : vector<32x1xf32>
      %cst_36 = arith.constant 2.000000e+00 : f32
      %63 = vector.broadcast %cst_36 : f32 to vector<32x1xf32>
      %64 = arith.mulf %62, %63 : vector<32x1xf32>
      %cst_37 = arith.constant 1.000000e-16 : f32
      %65 = vector.broadcast %cst_37 : f32 to vector<1x32xf32>
      %66 = arith.maximumf %59, %65 : vector<1x32xf32>
      %67 = math.rsqrt %66 : vector<1x32xf32>
      %68 = vector.broadcast %64 : vector<32x1xf32> to vector<32x32xf32>
      %69 = arith.mulf %20, %68 : vector<32x32xf32>
      %70 = vector.broadcast %67 : vector<1x32xf32> to vector<32x32xf32>
      %71 = arith.mulf %69, %70 : vector<32x32xf32>
      %cst_38 = arith.constant -1.000000e+30 : f32
      %72 = vector.broadcast %cst_38 : f32 to vector<32x32xf32>
      %73 = arith.select %53, %72, %71 : vector<32x32xi1>, vector<32x32xf32>
      %cst_39 = arith.constant dense<0xFF800000> : vector<32xf32>
      %74 = vector.multi_reduction <maximumf>, %73, %cst_39 [1] : vector<32x32xf32> to vector<32xf32>
      %75 = vector.shape_cast %74 : vector<32xf32> to vector<32x1xf32>
      %76 = vector.broadcast %75 : vector<32x1xf32> to vector<32x32xf32>
      %77 = arith.subf %73, %76 : vector<32x32xf32>
      %78 = math.exp %77 : vector<32x32xf32>
      %cst_40 = arith.constant dense<0.000000e+00> : vector<32xf32>
      %79 = vector.multi_reduction <add>, %78, %cst_40 [1] : vector<32x32xf32> to vector<32xf32>
      %80 = vector.shape_cast %79 : vector<32xf32> to vector<32x1xf32>
      %81 = math.log %80 : vector<32x1xf32>
      %82 = arith.addf %75, %81 : vector<32x1xf32>
      %83 = arith.subi %52, %51 : vector<32x32xi32>
      %84 = math.absi %83 : vector<32x32xi32>
      %c16_i32_41 = arith.constant 16 : i32
      %85 = vector.broadcast %c16_i32_41 : i32 to vector<32x32xi32>
      %86 = arith.cmpi eq, %84, %85 : vector<32x32xi32>
      %cst_42 = arith.constant 0.000000e+00 : f32
      %87 = vector.broadcast %cst_42 : f32 to vector<32x32xf32>
      %88 = arith.select %86, %71, %87 : vector<32x32xi1>, vector<32x32xf32>
      %cst_43 = arith.constant dense<0.000000e+00> : vector<32xf32>
      %89 = vector.multi_reduction <add>, %88, %cst_43 [1] : vector<32x32xf32> to vector<32xf32>
      %90 = vector.shape_cast %89 : vector<32xf32> to vector<32x1xf32>
      %91 = arith.subf %82, %90 : vector<32x1xf32>
      %92 = vector.shape_cast %91 : vector<32x1xf32> to vector<1x32x1xf32>
      %cst_44 = arith.constant dense<0.000000e+00> : vector<1xf32>
      %93 = vector.multi_reduction <add>, %92, %cst_44 [1, 2] : vector<1x32x1xf32> to vector<1xf32>
      %94 = vector.shape_cast %93 : vector<1xf32> to vector<1x1x1xf32>
      %95 = vector.extract %94[0, 0, 0] : f32 from vector<1x1x1xf32>
      %cst_45 = arith.constant 3.125000e-02 : f32
      %96 = arith.mulf %95, %cst_45 : f32
      %97 = arith.addf %96, %50 : f32
      %c0_46 = arith.constant 0 : index
      %c0_47 = arith.constant 0 : index
      %98 = memref.load %arg3[%c0_46, %c0_47] : memref<1x1xf32, #tpu.memory_space<smem>>
      memref.store %97, %arg3[%c0_46, %c0_47] : memref<1x1xf32, #tpu.memory_space<smem>>
    } else {
    }
    return
  }
  func.func @transform_0(%arg0: i32) -> (i32, i32) {
    %c0_i32 = arith.constant 0 : i32
    %c0_i32_0 = arith.constant 0 : i32
    return %arg0, %c0_i32 : i32, i32
  }
  func.func @transform_1(%arg0: i32) -> (i32, i32) {
    %c0_i32 = arith.constant 0 : i32
    %c0_i32_0 = arith.constant 0 : i32
    return %arg0, %c0_i32 : i32, i32
  }
  func.func @transform_2(%arg0: i32) -> (i32, i32) {
    %c0_i32 = arith.constant 0 : i32
    %c0_i32_0 = arith.constant 0 : i32
    %c0_i32_1 = arith.constant 0 : i32
    return %c0_i32, %c0_i32_0 : i32, i32
  }
}

</mosaic_0001>

<bundles_post_ra>
// kernel: tpu_custom_call.1
= control target key start
LH: loop header
LB: loop body
LE: loop exit
PB: predicated region body
PF: predicated region fallthrough
CT: control target
= control target key end

     0   :  { %7 = vsyncpa [#allocation6], 0  ;;  %s761_s0 = inlined_call_operand.hbm [shape: f32[8,16], index: 0, kind: input, shape index: {}]   ;;  %s762_s1 = inlined_call_operand.hbm [shape: f32[8,16], index: 1, kind: input, shape index: {}]   ;;  %s763_s2 = inlined_call_operand.hbm [shape: f32[1,1], index: 2, kind: output, shape index: {}]  }
   0x1   :  { %8 = vsyncpa [#allocation9], 0 }
   0x2   :  { %9 = vsyncpa [#allocation7], 0  ;;  %s15_s11 = sshll.u32 %s761_s0, 4  ;;  %s597_s12 = smov [#allocation5]   ;;  %s16_s11 = int_to_ptr.hbm [resolvable:$true] %s15_s11 }
   0x3   :  { %s17_s13 = sshll.u32 %s597_s12, 4  ;;  %s26_s16 = sshll.u32 %s762_s1, 4  ;;  %s18_s13 = int_to_ptr.vmem [resolvable:$true] %s17_s13  ;;  %s27_s16 = int_to_ptr.hbm [resolvable:$true] %s26_s16 }
   0x4   :  { %20 = dma.hbm_to_vmem [thread:$0]  %s16_s11, 128, %s18_s13, [#allocation6]  }
   0x5   :  { %s598_s17 = smov [#allocation8]  }
   0x6   :  { %s28_s18 = sshll.u32 %s598_s17, 4  ;;  %s29_s18 = int_to_ptr.vmem [resolvable:$true] %s28_s18 }
   0x7   :  { %31 = dma.hbm_to_vmem [thread:$0]  %s27_s16, 128, %s29_s18, [#allocation9]  }
   0x8   :  { %591 = dma.done.wait [#allocation6], 128  }
   0x9   :  { %592 = vsyncadd [#allocation6], 4294967168 }
   0xa   :  { %593 = dma.done.wait [#allocation9], 128  }
   0xb   :  { %594 = vsyncadd [#allocation9], 4294967168  ;;  %v54_v0 = vld [vmem:[#allocation8] sm:$0xff]  ;;  %s599_s0 = smov 16   ;;  %vm52_vm0 = vcmask 130048   ;;  %v51_v1 = vld [vmem:[#allocation5] sm:$0xff]  ;;  %v168_v13 = vlaneseq }
   0xc   :  { %56 = vrot.lane.b32.xlu0 %v54_v0, %s599_s0  ;;  %53 = vst.msk [vmem:[#allocation2] sm:$0xff] %vm52_vm0, %v51_v1  ;;  %vm49_vm1 = vcmask 253952   ;;  %vm44_vm2 = vcmask 261120   ;;  %v600_v2 = vmov 0.0   ;;  %vm59_vm3 = vcmask 261248   ;;  %s463_s26 = sshll.u32 %s763_s2, 4  ;;  %s464_s26 = int_to_ptr.hbm [resolvable:$true] %s463_s26 }
   0xd   :  { %50 = vst.msk [vmem:[#allocation4] sm:$0x1] %vm49_vm1, %v600_v2  ;;  %v631_v15 = vand.u32 127, %v168_v13  ;;  %vm98_vm5 = vcmask 64512   ;;  %v646_v0 = vshrl.u32 %v168_v13, 7  ;;  %s601_s30 = smov [#allocation10]  }
   0xe   :  { %45 = vst.msk [vmem:[#allocation3] sm:$0xff] %vm44_vm2, %v600_v2 }
   0xf   :  { %46 = vst.msk [vmem:[#allocation3 + $0x8] sm:$0xff] %vm44_vm2, %v600_v2  ;;  %vm170_vm4 = vcmp.lt.s32.totalorder %v631_v15, 16  ;;  %vm249_vm14 = vcmp.eq.s32.totalorder %v646_v0, %v631_v15 }
  0x10   :  { %47 = vst.msk [vmem:[#allocation3 + $0x10] sm:$0xff] %vm44_vm2, %v600_v2 }
  0x11   :  { %48 = vst.msk [vmem:[#allocation3 + $0x18] sm:$0xff] %vm44_vm2, %v600_v2 }
  0x14   :  { %v149_v11 = vld [vmem:[#allocation4] sm:$0x1] }
  0x15   :  { %v62_v61 = vld [vmem:[#allocation3] sm:$0xff] }
  0x16   :  { %v63_v1 = vld [vmem:[#allocation3 + $0x8] sm:$0xff] }
  0x7e   :  { %v57_v3 = vpop.permute.xlu0 %56 }
  0x7f   :  { %60 = vst.msk [vmem:[#allocation2] sm:$0xff] %vm59_vm3, %v57_v3 }
  0x86   :  { %v61_v4 = vld [vmem:[#allocation2] sm:$0xff] }
  0x87   :  { %66 = vxpose.xlu0.b32.start.end [1/1] (short) (narrow) %v61_v4, 32  ;;  %v150_v5 = vsel %vm44_vm2, %v61_v4, 0.0  ;;  %126 = vmatpush.msra.mxu0 %v61_v4 }
  0x88   :  { %v151_v6 = vrot.slane %v150_v5, 4  ;;  %479 = vmatpush.msra.mxu1 %v61_v4  ;;  %480 = vmatpush.msra.mxu2 %v61_v4 }
  0x89   :  { %481 = vmatpush.msra.mxu3 %v61_v4 }
  0x8a   :  { %v152_v7 = vadd.f32 %v151_v6, %v150_v5 }
  0x8c   :  { %v153_v8 = vrot.slane %v152_v7, 2 }
  0x8e   :  { %v154_v9 = vadd.f32 %v153_v8, %v152_v7  ;;  %v659_v7 = vadd.s32 8, %v646_v0 }
  0x90   :  { %v155_v10 = vrot.slane %v154_v9, 1  ;;  %vm250_vm15 = vcmp.eq.s32.totalorder %v659_v7, %v631_v15 }
  0x92   :  { %v156_v12 = vadd.f32 %v155_v10, %v154_v9 }
  0x94   :  { %v157_v14 = vadd.f32 %v156_v12, %v149_v11  ;;  %v64_v11 = vld [vmem:[#allocation3 + $0x10] sm:$0xff] }
  0x96   :  { %159 = vst.msk [vmem:[#allocation4] sm:$0x1] %vm49_vm1, %v157_v14 }
  0x9d   :  { %v634_v16 = vld [vmem:[#allocation4] sm:$0x1] }
  0x9e   :  { %v171_v17 = vsel %vm170_vm4, %v634_v16, 0.0  ;;  %v182_v19 = vsel %vm170_vm4, 0.0, %v634_v16 }
  0x9f   :  { %v172_v18 = vsel %vm49_vm1, %v171_v17, 0.0  ;;  %v183_v20 = vsel %vm49_vm1, %v182_v19, 0.0  ;;  %v672_v17 = vadd.s32 16, %v646_v0 }
  0xa0   :  { %173 = vadd.xlane.f32.xlu1 %v172_v18  ;;  %v65_v18 = vld [vmem:[#allocation3 + $0x18] sm:$0xff] }
  0xa1   :  { %vm251_vm0 = vcmp.eq.s32.totalorder %v672_v17, %v631_v15 }
  0xa8   :  { %184 = vadd.xlane.f32.xlu1 %v183_v20 }
 0x113   :  { %v174_v21 = vpop.xlane.xlu1 %173 }
 0x114   :  { %v175_v22 = vrot.slane %v174_v21, 4 }
 0x116   :  { %v176_v23 = vadd.f32 %v175_v22, %v174_v21 }
 0x118   :  { %v177_v24 = vrot.slane %v176_v23, 2 }
 0x11a   :  { %v178_v25 = vadd.f32 %v177_v24, %v176_v23  ;;  %v685_v24 = vadd.s32 24, %v646_v0 }
 0x11b   :  { %v185_v26 = vpop.xlane.xlu1 %184 }
 0x11c   :  { %v186_v27 = vrot.slane %v185_v26, 4  ;;  %v179_v28 = vrot.slane %v178_v25, 1  ;;  %vm252_vm3 = vcmp.eq.s32.totalorder %v685_v24, %v631_v15 }
 0x11e   :  { %v187_v29 = vadd.f32 %v186_v27, %v185_v26  ;;  %v180_v30 = vadd.f32 %v179_v28, %v178_v25 }
 0x120   :  { %v188_v31 = vrot.slane %v187_v29, 2  ;;  %482 = vpush %v180_v30 }
 0x122   :  { %v189_v32 = vadd.f32 %v188_v31, %v187_v29 }
 0x124   :  { %v190_v33 = vrot.slane %v189_v32, 1 }
 0x126   :  { %v191_v34 = vadd.f32 %v190_v33, %v189_v32 }
 0x128   :  { %484 = vpush %v191_v34 }
 0x12b   :  { %v82_v35 = vpop.trf.xlu0 }
 0x12c   :  { %475 = vmatmul.msk.f32.vlgmr.msra.gmra.mxu0 %vm98_vm5, %v82_v35 }
 0x133   :  { %v83_v36 = vpop.trf.xlu0 }
 0x134   :  { %476 = vmatmul.msk.f32.vlgmr.msra.gmra.mxu1 %vm98_vm5, %v83_v36 }
 0x13b   :  { %v84_v37 = vpop.trf.xlu0 }
 0x13c   :  { %477 = vmatmul.msk.f32.vlgmr.msra.gmra.mxu2 %vm98_vm5, %v84_v37 }
 0x143   :  { %v85_v38 = vpop.trf.xlu0 }
 0x144   :  { %478 = vmatmul.msk.f32.vlgmr.msra.gmra.mxu3 %vm98_vm5, %v85_v38 }
 0x151   :  { %s483_s1 = spop %482 }
 0x152   :  { %v193_v39 = vstv %s483_s1 }
 0x153   :  { %499 = vrcp.f32 %v193_v39  ;;  %v205_v44 = vand.u32 2147483648, %v193_v39  ;;  %v203_v46 = vand.u32 2147483647, %v193_v39  ;;  %vm199_vm7 = vweird.f32 %v193_v39 }
 0x155   :  { %v206_v49 = vor.u32 1.1754944e-38, %v205_v44  ;;  %vm204_vm9 = vcmp.eq.f32.partialorder %v203_v46, 8.507059e+37 }
 0x159   :  { %v500_v40 = vpop.eup %499  ;;  %s485_s19 = spop %484 }
 0x15a   :  { %v195_v41 = vmul.f32 %v500_v40, %v193_v39  ;;  %v211_v42 = vstv %s485_s19  ;;  %vm200_vm6 = vweird.f32 %v500_v40 }
 0x15b   :  { %501 = vrcp.f32 %v211_v42  ;;  %vm201_vm8 = vmor %vm199_vm7, %vm200_vm6  ;;  %v223_v54 = vand.u32 2147483648, %v211_v42  ;;  %v221_v56 = vand.u32 2147483647, %v211_v42  ;;  %vm217_vm11 = vweird.f32 %v211_v42 }
 0x15c   :  { %v196_v43 = vsub.f32 1.0, %v195_v41 }
 0x15d   :  { %v224_v58 = vor.u32 1.1754944e-38, %v223_v54  ;;  %vm222_vm13 = vcmp.eq.f32.partialorder %v221_v56, 8.507059e+37 }
 0x15e   :  { %v197_v45 = vmul.f32 %v500_v40, %v196_v43 }
 0x160   :  { %v198_v47 = vadd.f32 %v500_v40, %v197_v45 }
 0x161   :  { %v502_v48 = vpop.eup %501 }
 0x162   :  { %v213_v50 = vmul.f32 %v502_v48, %v211_v42  ;;  %v202_v51 = vsel %vm201_vm8, %v500_v40, %v198_v47  ;;  %vm218_vm10 = vweird.f32 %v502_v48 }
 0x163   :  { %v207_v52 = vsel %vm204_vm9, %v206_v49, %v202_v51  ;;  %vm219_vm12 = vmor %vm217_vm11, %vm218_vm10 }
 0x164   :  { %v214_v53 = vsub.f32 1.0, %v213_v50  ;;  %486 = vpush %v207_v52 }
 0x166   :  { %v215_v55 = vmul.f32 %v502_v48, %v214_v53 }
 0x168   :  { %v216_v57 = vadd.f32 %v502_v48, %v215_v55 }
 0x16a   :  { %v220_v59 = vsel %vm219_vm12, %v502_v48, %v216_v57  ;;  %v398_v57 = vsub.s32 %v631_v15, %v659_v7  ;;  %v400_v7 = vsub.s32 %v631_v15, %v685_v24  ;;  %v397_v24 = vsub.s32 %v631_v15, %v646_v0 }
 0x16b   :  { %v225_v60 = vsel %vm222_vm13, %v224_v58, %v220_v59 }
 0x16c   :  { %488 = vpush %v225_v60  ;;  %vm404_vm13 = vcmp.lt.s32.totalorder %v398_v57, 0 }
 0x195   :  { %s487_s20 = spop %486 }
 0x19d   :  { %s489_s21 = spop %488 }
 0x1a9   :  { %v128_v62 = vpop.f32.mrf.mxu0 }
 0x1aa   :  { %v140_v63 = vadd.f32 %v128_v62, %v62_v61 }
 0x1ac   :  { %145 = vst.msk [vmem:[#allocation3] sm:$0xff] %vm44_vm2, %v140_v63 }
 0x1b1   :  { %v131_v2 = vpop.f32.mrf.mxu1 }
 0x1b2   :  { %v141_v3 = vadd.f32 %v131_v2, %v63_v1 }
 0x1b3   :  { %v650_v4 = vld [vmem:[#allocation3] sm:$0xff] }
 0x1b4   :  { %146 = vst.msk [vmem:[#allocation3 + $0x8] sm:$0xff] %vm44_vm2, %v141_v3  ;;  %v253_v5 = vsel %vm249_vm14, %v650_v4, 0.0  ;;  %v405_v3 = vsub.s32 0, %v398_v57 }
 0x1b5   :  { %v257_v6 = vsel %vm44_vm2, %v253_v5, 0.0 }
 0x1b6   :  { %258 = vadd.xlane.f32.xlu2 %v257_v6 }
 0x1bb   :  { %v663_v8 = vld [vmem:[#allocation3 + $0x8] sm:$0xff] }
 0x1bc   :  { %v254_v9 = vsel %vm250_vm15, %v663_v8, 0.0 }
 0x1bd   :  { %v260_v10 = vsel %vm44_vm2, %v254_v9, 0.0 }
 0x1be   :  { %261 = vadd.xlane.f32.xlu2 %v260_v10  ;;  %v269_v12 = vadd.f32 %v260_v10, %v257_v6 }
 0x1bf   :  { %v134_v13 = vpop.f32.mrf.mxu2 }
 0x1c0   :  { %v142_v14 = vadd.f32 %v134_v13, %v64_v11  ;;  %v406_v11 = vsel %vm404_vm13, %v405_v3, %v398_v57 }
 0x1c2   :  { %147 = vst.msk [vmem:[#allocation3 + $0x10] sm:$0xff] %vm44_vm2, %v142_v14 }
 0x1c7   :  { %v137_v19 = vpop.f32.mrf.mxu3 }
 0x1c8   :  { %v143_v20 = vadd.f32 %v137_v19, %v65_v18 }
 0x1c9   :  { %v676_v21 = vld [vmem:[#allocation3 + $0x10] sm:$0xff] }
 0x1ca   :  { %148 = vst.msk [vmem:[#allocation3 + $0x18] sm:$0xff] %vm44_vm2, %v143_v20  ;;  %v255_v22 = vsel %vm251_vm0, %v676_v21, 0.0 }
 0x1cb   :  { %v263_v23 = vsel %vm44_vm2, %v255_v22, 0.0 }
 0x1cc   :  { %264 = vadd.xlane.f32.xlu1 %v263_v23  ;;  %v270_v25 = vadd.f32 %v269_v12, %v263_v23  ;;  %v399_v23 = vsub.s32 %v631_v15, %v672_v17 }
 0x1d1   :  { %v689_v26 = vld [vmem:[#allocation3 + $0x18] sm:$0xff] }
 0x1d2   :  { %v256_v27 = vsel %vm252_vm3, %v689_v26, 0.0 }
 0x1d3   :  { %v266_v28 = vsel %vm44_vm2, %v256_v27, 0.0 }
 0x1d4   :  { %267 = vadd.xlane.f32.xlu2 %v266_v28  ;;  %v271_v29 = vadd.f32 %v270_v25, %v266_v28 }
 0x1d6   :  { %v272_v30 = vrot.slane %v271_v29, 4 }
 0x1d8   :  { %v273_v31 = vadd.f32 %v272_v30, %v271_v29 }
 0x1da   :  { %v274_v32 = vrot.slane %v273_v31, 2 }
 0x1dc   :  { %v275_v33 = vadd.f32 %v274_v32, %v273_v31  ;;  %v408_v31 = vsub.s32 0, %v399_v23 }
 0x1de   :  { %v276_v34 = vrot.slane %v275_v33, 1 }
 0x1e0   :  { %v277_v35 = vadd.f32 %v276_v34, %v275_v33 }
 0x1e2   :  { %v326_v36 = vmax.f32 %v277_v35, 1e-16 }
 0x1e4   :  { %503 = vrsqrt.f32 %v326_v36  ;;  %vm333_vm9 = vweird.f32 %v326_v36 }
 0x1ea   :  { %v504_v38 = vpop.eup %503 }
 0x1eb   :  { %v328_v40 = vmul.f32 %v504_v38, %v326_v36  ;;  %vm334_vm8 = vweird.f32 %v504_v38 }
 0x1ec   :  { %vm335_vm10 = vmor %vm333_vm9, %vm334_vm8  ;;  %vm407_vm8 = vcmp.lt.s32.totalorder %v399_v23, 0 }
 0x1ed   :  { %v329_v41 = vmul.f32 %v504_v38, %v328_v40 }
 0x1ef   :  { %v330_v47 = vmul.f32 0.5, %v329_v41 }
 0x1f1   :  { %v331_v50 = vsub.f32 1.5, %v330_v47 }
 0x1f3   :  { %v332_v56 = vmul.f32 %v504_v38, %v331_v50 }
 0x1f5   :  { %v699_v1 = vsel %vm335_vm10, %v504_v38, %v332_v56 }
 0x229   :  { %v259_v37 = vpop.xlane.xlu2 %258 }
 0x22a   :  { %v278_v39 = vmax.f32 %v259_v37, 1e-16  ;;  %v409_v37 = vsel %vm407_vm8, %v408_v31, %v399_v23 }
 0x22b   :  { %vm415_vm10 = vcmp.eq.s32.totalorder %v409_v37, 16 }
 0x22c   :  { %505 = vrsqrt.f32 %v278_v39  ;;  %vm288_vm6 = vweird.f32 %v278_v39 }
 0x231   :  { %v262_v42 = vpop.xlane.xlu2 %261 }
 0x232   :  { %v506_v43 = vpop.eup %505  ;;  %v279_v44 = vmax.f32 %v262_v42, 1e-16  ;;  %v411_v42 = vsub.s32 0, %v400_v7 }
 0x233   :  { %v283_v45 = vmul.f32 %v506_v43, %v278_v39  ;;  %vm289_vm5 = vweird.f32 %v506_v43 }
 0x234   :  { %507 = vrsqrt.f32 %v279_v44  ;;  %vm290_vm7 = vmor %vm288_vm6, %vm289_vm5  ;;  %vm298_vm12 = vweird.f32 %v279_v44  ;;  %vm414_vm6 = vcmp.eq.s32.totalorder %v406_v11, 16 }
 0x235   :  { %v284_v46 = vmul.f32 %v506_v43, %v283_v45 }
 0x237   :  { %v285_v48 = vmul.f32 0.5, %v284_v46 }
 0x239   :  { %v286_v49 = vsub.f32 1.5, %v285_v48 }
 0x23a   :  { %v508_v51 = vpop.eup %507 }
 0x23b   :  { %v287_v52 = vmul.f32 %v506_v43, %v286_v49  ;;  %v293_v53 = vmul.f32 %v508_v51, %v279_v44  ;;  %vm299_vm11 = vweird.f32 %v508_v51 }
 0x23c   :  { %vm300_vm5 = vmor %vm298_vm12, %vm299_vm11  ;;  %vm410_vm12 = vcmp.lt.s32.totalorder %v400_v7, 0 }
 0x23d   :  { %v294_v54 = vmul.f32 %v508_v51, %v293_v53  ;;  %v291_v55 = vsel %vm290_vm7, %v506_v43, %v287_v52  ;;  %v412_v48 = vsel %vm410_vm12, %v411_v42, %v400_v7 }
 0x23e   :  { %v322_v58 = vmul.f32 2.0, %v291_v55 }
 0x23f   :  { %v295_v59 = vmul.f32 0.5, %v294_v54  ;;  %v265_v60 = vpop.xlane.xlu1 %264 }
 0x240   :  { %v280_v61 = vmax.f32 %v265_v60, 1e-16  ;;  %v337_v62 = vmul.f32 %v322_v58, %v650_v4  ;;  %v402_v60 = vsub.s32 0, %v397_v24 }
 0x241   :  { %v296_v63 = vsub.f32 1.5, %v295_v59 }
 0x242   :  { %509 = vrsqrt.f32 %v280_v61  ;;  %v702_v2 = vmul.f32 %v337_v62, %v699_v1  ;;  %vm308_vm7 = vweird.f32 %v280_v61  ;;  %v209_v62 = vstv %s487_s20 }
 0x243   :  { %v297_v5 = vmul.f32 %v508_v51, %v296_v63 }
 0x244   :  { %v345_v6 = vsel %vm249_vm14, -1e+30, %v702_v2 }
 0x245   :  { %v349_v4 = vsel %vm44_vm2, %v345_v6, -inf  ;;  %v301_v9 = vsel %vm300_vm5, %v508_v51, %v297_v5  ;;  %vm416_vm5 = vcmp.eq.s32.totalorder %v412_v48, 16 }
 0x246   :  { %350 = vmax.xlane.f32.xlu1 %v349_v4  ;;  %v323_v10 = vmul.f32 2.0, %v301_v9 }
 0x247   :  { %v268_v12 = vpop.xlane.xlu2 %267 }
 0x248   :  { %v510_v13 = vpop.eup %509  ;;  %v281_v14 = vmax.f32 %v268_v12, 1e-16  ;;  %v338_v18 = vmul.f32 %v323_v10, %v663_v8 }
 0x249   :  { %v303_v19 = vmul.f32 %v510_v13, %v280_v61  ;;  %vm309_vm14 = vweird.f32 %v510_v13  ;;  %v227_v61 = vstv %s489_s21 }
 0x24a   :  { %511 = vrsqrt.f32 %v281_v14  ;;  %v342_v20 = vmul.f32 %v338_v18, %v699_v1  ;;  %vm310_vm9 = vmor %vm308_vm7, %vm309_vm14  ;;  %vm318_vm11 = vweird.f32 %v281_v14 }
 0x24b   :  { %v304_v22 = vmul.f32 %v510_v13, %v303_v19 }
 0x24c   :  { %v346_v25 = vsel %vm250_vm15, -1e+30, %v342_v20  ;;  %v716_v27 = vsel %vm414_vm6, %v342_v20, 0.0 }
 0x24d   :  { %v305_v28 = vmul.f32 0.5, %v304_v22  ;;  %v352_v29 = vsel %vm44_vm2, %v346_v25, -inf }
 0x24e   :  { %353 = vmax.xlane.f32.xlu2 %v352_v29  ;;  %v424_v29 = vsel %vm44_vm2, %v716_v27, 0.0 }
 0x24f   :  { %v306_v8 = vsub.f32 1.5, %v305_v28 }
 0x250   :  { %v512_v30 = vpop.eup %511 }
 0x251   :  { %v307_v32 = vmul.f32 %v510_v13, %v306_v8  ;;  %v313_v33 = vmul.f32 %v512_v30, %v281_v14  ;;  %vm319_vm15 = vweird.f32 %v512_v30 }
 0x252   :  { %vm320_vm13 = vmor %vm318_vm11, %vm319_vm15 }
 0x253   :  { %v314_v34 = vmul.f32 %v512_v30, %v313_v33  ;;  %v311_v35 = vsel %vm310_vm9, %v510_v13, %v307_v32 }
 0x254   :  { %v324_v36 = vmul.f32 2.0, %v311_v35 }
 0x255   :  { %v315_v38 = vmul.f32 0.5, %v314_v34 }
 0x256   :  { %v339_v39 = vmul.f32 %v324_v36, %v676_v21 }
 0x257   :  { %v316_v40 = vsub.f32 1.5, %v315_v38 }
 0x258   :  { %v343_v41 = vmul.f32 %v339_v39, %v699_v1 }
 0x259   :  { %v317_v43 = vmul.f32 %v512_v30, %v316_v40 }
 0x25a   :  { %v347_v44 = vsel %vm251_vm0, -1e+30, %v343_v41  ;;  %v419_v45 = vsel %vm415_vm10, %v343_v41, 0.0  ;;  %vm401_vm0 = vcmp.lt.s32.totalorder %v397_v24, 0 }
 0x25b   :  { %v355_v46 = vsel %vm44_vm2, %v347_v44, -inf  ;;  %v321_v47 = vsel %vm320_vm13, %v512_v30, %v317_v43  ;;  %v403_v3 = vsel %vm401_vm0, %v402_v60, %v397_v24  ;;  %v427_v15 = vsel %vm44_vm2, %v419_v45, 0.0 }
 0x25c   :  { %356 = vmax.xlane.f32.xlu1 %v355_v46  ;;  %v325_v21 = vmul.f32 2.0, %v321_v47 }
 0x25e   :  { %v340_v49 = vmul.f32 %v325_v21, %v689_v26 }
 0x260   :  { %v344_v50 = vmul.f32 %v340_v49, %v699_v1  ;;  %v228_v1 = vmul.f32 %v227_v61, %v634_v16 }
 0x262   :  { %v348_v51 = vsel %vm252_vm3, -1e+30, %v344_v50  ;;  %v420_v52 = vsel %vm416_vm5, %v344_v50, 0.0  ;;  %vm413_vm3 = vcmp.eq.s32.totalorder %v403_v3, 16 }
 0x263   :  { %v358_v17 = vsel %vm44_vm2, %v348_v51, -inf  ;;  %v417_v11 = vsel %vm413_vm3, %v702_v2, 0.0  ;;  %v430_v8 = vsel %vm44_vm2, %v420_v52, 0.0 }
 0x264   :  { %359 = vmax.xlane.f32.xlu2 %v358_v17  ;;  %v421_v12 = vsel %vm44_vm2, %v417_v11, 0.0 }
 0x2b9   :  { %v733_v53 = vpop.xlane.xlu1 %350 }
 0x2ba   :  { %v361_v54 = vsub.f32 %v345_v6, %v733_v53  ;;  %v210_v6 = vmul.f32 %v209_v62, %v634_v16 }
 0x2bc   :  { %v365_v55 = vmul.f32 1.442695, %v361_v54  ;;  %v229_v9 = vsel %vm170_vm4, %v210_v6, %v228_v1 }
 0x2be   :  { %513 = vpow2.f32 %v365_v55 }
 0x2c1   :  { %v736_v56 = vpop.xlane.xlu2 %353 }
 0x2c2   :  { %v362_v26 = vsub.f32 %v346_v25, %v736_v56 }
 0x2c4   :  { %v514_v57 = vpop.eup %513  ;;  %v367_v58 = vmul.f32 1.442695, %v362_v26 }
 0x2c5   :  { %v373_v59 = vsel %vm44_vm2, %v514_v57, 0.0 }
 0x2c6   :  { %515 = vpow2.f32 %v367_v58  ;;  %374 = vadd.xlane.f32.xlu1 %v373_v59 }
 0x2c7   :  { %517 = vlog2.f32 %v229_v9 }
 0x2cc   :  { %v516_v63 = vpop.eup %515 }
 0x2cd   :  { %v376_v5 = vsel %vm44_vm2, %v516_v63, 0.0  ;;  %v518_v18 = vpop.eup %517 }
 0x2ce   :  { %377 = vadd.xlane.f32.xlu2 %v376_v5  ;;  %v231_v22 = vmul.f32 0.6931472, %v518_v18 }
 0x2cf   :  { %v357_v0 = vpop.xlane.xlu1 %356 }
 0x2d0   :  { %v363_v4 = vsub.f32 %v347_v44, %v357_v0  ;;  %v232_v23 = vmul.f32 %v231_v22, %v229_v9 }
 0x2d2   :  { %v369_v10 = vmul.f32 1.442695, %v363_v4  ;;  %v233_v28 = vsel %vm49_vm1, %v232_v23, 0.0  ;;  %vm437_vm1 = vcmask 7168  }
 0x2d4   :  { %519 = vpow2.f32 %v369_v10 }
 0x2d6   :  { %422 = vadd.xlane.f32.xlu2 %v421_v12 }
 0x2d7   :  { %v360_v13 = vpop.xlane.xlu2 %359 }
 0x2d8   :  { %v364_v14 = vsub.f32 %v348_v51, %v360_v13 }
 0x2da   :  { %v520_v19 = vpop.eup %519  ;;  %v371_v16 = vmul.f32 1.442695, %v364_v14 }
 0x2db   :  { %v379_v20 = vsel %vm44_vm2, %v520_v19, 0.0 }
 0x2dc   :  { %521 = vpow2.f32 %v371_v16  ;;  %380 = vadd.xlane.f32.xlu0 %v379_v20 }
 0x2de   :  { %428 = vadd.xlane.f32.xlu2 %v427_v15 }
 0x2e2   :  { %v522_v2 = vpop.eup %521 }
 0x2e3   :  { %v382_v25 = vsel %vm44_vm2, %v522_v2, 0.0 }
 0x2e4   :  { %383 = vadd.xlane.f32.xlu1 %v382_v25 }
 0x2e6   :  { %234 = vadd.xlane.f32.xlu2 %v233_v28 }
 0x2ec   :  { %425 = vadd.xlane.f32.xlu1 %v424_v29 }
 0x2f4   :  { %431 = vadd.xlane.f32.xlu1 %v430_v8 }
 0x339   :  { %v375_v32 = vpop.xlane.xlu1 %374 }
 0x33a   :  { %523 = vlog2.f32 %v375_v32 }
 0x340   :  { %v524_v35 = vpop.eup %523 }
 0x341   :  { %v378_v30 = vpop.xlane.xlu2 %377  ;;  %v386_v39 = vmul.f32 0.6931472, %v524_v35 }
 0x342   :  { %525 = vlog2.f32 %v378_v30 }
 0x343   :  { %v393_v43 = vadd.f32 %v386_v39, %v733_v53 }
 0x348   :  { %v526_v7 = vpop.eup %525 }
 0x349   :  { %v423_v31 = vpop.xlane.xlu2 %422  ;;  %v388_v27 = vmul.f32 0.6931472, %v526_v7 }
 0x34a   :  { %v433_v21 = vsub.f32 %v393_v43, %v423_v31 }
 0x34b   :  { %v394_v45 = vadd.f32 %v388_v27, %v736_v56 }
 0x34c   :  { %v438_v54 = vsel %vm437_vm1, %v433_v21, 0.0 }
 0x34f   :  { %v381_v33 = vpop.xlane.xlu0 %380 }
 0x350   :  { %527 = vlog2.f32 %v381_v33 }
 0x351   :  { %v429_v34 = vpop.xlane.xlu2 %428 }
 0x356   :  { %v528_v37 = vpop.eup %527 }
 0x357   :  { %v384_v36 = vpop.xlane.xlu1 %383  ;;  %v390_v41 = vmul.f32 0.6931472, %v528_v37 }
 0x358   :  { %529 = vlog2.f32 %v384_v36 }
 0x359   :  { %v235_v38 = vpop.xlane.xlu2 %234  ;;  %v395_v48 = vadd.f32 %v390_v41, %v357_v0 }
 0x35a   :  { %v236_v40 = vrot.slane %v235_v38, 4 }
 0x35b   :  { %v435_v55 = vsub.f32 %v395_v48, %v429_v34 }
 0x35c   :  { %v237_v42 = vadd.f32 %v236_v40, %v235_v38 }
 0x35d   :  { %v441_v24 = vsel %vm437_vm1, %v435_v55, 0.0 }
 0x35e   :  { %v238_v44 = vrot.slane %v237_v42, 2  ;;  %v530_v46 = vpop.eup %529 }
 0x35f   :  { %v426_v47 = vpop.xlane.xlu1 %425  ;;  %v392_v51 = vmul.f32 0.6931472, %v530_v46 }
 0x360   :  { %v239_v49 = vadd.f32 %v238_v44, %v237_v42  ;;  %v434_v50 = vsub.f32 %v394_v45, %v426_v47 }
 0x361   :  { %v396_v58 = vadd.f32 %v392_v51, %v360_v13 }
 0x362   :  { %v439_v52 = vsel %vm437_vm1, %v434_v50, 0.0  ;;  %v240_v17 = vrot.slane %v239_v49, 1 }
 0x363   :  { %v440_v57 = vadd.f32 %v439_v52, %v438_v54 }
 0x364   :  { %v241_v26 = vadd.f32 %v240_v17, %v239_v49 }
 0x365   :  { %v442_v56 = vadd.f32 %v441_v24, %v440_v57 }
 0x366   :  { %490 = vpush %v241_v26 }
 0x367   :  { %v432_v53 = vpop.xlane.xlu1 %431 }
 0x368   :  { %v436_v59 = vsub.f32 %v396_v58, %v432_v53 }
 0x36a   :  { %v443_v60 = vsel %vm437_vm1, %v436_v59, 0.0 }
 0x36b   :  { %v444_v61 = vadd.f32 %v443_v60, %v442_v56 }
 0x36d   :  { %445 = vadd.xlane.f32.xlu1 %v444_v61 }
 0x397   :  { %s491_s22 = spop %490 }
 0x398   :  { %s243_s27 = sadd.f32 5.5451775, %s491_s22 }
 0x3e0   :  { %v446_v62 = vpop.xlane.xlu1 %445 }
 0x3e1   :  { %v447_v63 = vrot.slane %v446_v62, 4 }
 0x3e3   :  { %v448_v1 = vadd.f32 %v447_v63, %v446_v62 }
 0x3e5   :  { %v449_v3 = vrot.slane %v448_v1, 2 }
 0x3e7   :  { %v450_v5 = vadd.f32 %v449_v3, %v448_v1 }
 0x3e9   :  { %v451_v6 = vrot.slane %v450_v5, 1 }
 0x3eb   :  { %v452_v0 = vadd.f32 %v451_v6, %v450_v5 }
 0x3ed   :  { %492 = vpush %v452_v0 }
 0x41e   :  { %s493_s23 = spop %492 }
 0x41f   :  { %s454_s28 = smul.f32 0.03125, %s493_s23 }
 0x421   :  { %s455_s29 = sadd.f32 %s454_s28, %s243_s27 }
 0x423   :  { %457 = sst [smem:[#allocation10]] %s455_s29 }
 0x424   :  { %466 = dma.smem_to_hbm %s601_s30, 16, %s464_s26, [#allocation7]  }
 0x425   :  { %595 = dma.done.wait [#allocation7], 16  }
 0x426   :  { %596 = vsyncadd [#allocation7], 4294967280 }
 0x427   :  { %471 = sfence }
 0x428   :  { %472 = vsyncpa [#allocation6], 1 }
 0x429   :  { %473 = vsyncpa [#allocation9], 1 }
 0x42a   :  { %474 = vsyncpa [#allocation7], 1 }

</bundles_post_ra>
